<compile_context>
chip_gen: v5e
topology: v5e:2x2
jax: 0.10.0
libtpu: 0.0.40
codegen_flags: <defaults>
</compile_context>

<pallas_src>
import functools

import jax
import jax.numpy as jnp
from jax.experimental import pallas as pl
from jax.experimental.pallas import tpu as pltpu


def _round_up(x: int, m: int) -> int:
    return ((x + m - 1) // m) * m


def _pick_tile(dim_pad: int, cap: int) -> int:
    """Largest multiple of 128 <= cap that divides dim_pad (dim_pad % 128 == 0)."""
    if dim_pad <= cap:
        return dim_pad
    t = (cap // 128) * 128
    while t > 128 and dim_pad % t != 0:
        t -= 128
    return t


def _vmem_limit_bytes() -> int:
    """Device-aware VMEM budget: ~100 MiB on 128-MiB parts (v5e/v6e),
    ~82% of capacity on 64-MiB parts (v7x). Conservative default if query fails."""
    cap = 64 * 1024 * 1024
    try:
        cap = int(getattr(pltpu.get_tpu_info(), "vmem_capacity_bytes", cap))
    except Exception:
        pass
    if cap >= 128 * 1024 * 1024:
        return 100 * 1024 * 1024
    return int(cap * 0.82)


# ---------------------------------------------------------------------------
# Parameter preparation (done ONCE, hoisted out of the per-call path).
# ---------------------------------------------------------------------------
def prepare_mlp_params(params, compute_dtype=jnp.bfloat16):
    """Pad each layer's weight/bias to 128-multiples and cast weights to bf16.

    Zero padding is self-preserving through the whole MLP: padded weight
    rows/cols and padded bias lanes are zero, so padded activation lanes stay
    exactly zero after bias + ReLU."""
    prepared = []
    for (w, b) in params:
        d_in, d_out = w.shape
        k_pad = _round_up(d_in, 128)
        n_pad = _round_up(d_out, 128)
        w_p = jnp.zeros((k_pad, n_pad), compute_dtype)
        w_p = w_p.at[:d_in, :d_out].set(w.astype(compute_dtype))
        b_p = jnp.zeros((1, n_pad), jnp.float32)
        b_p = b_p.at[0, :d_out].set(b.astype(jnp.float32))
        prepared.append({"w": w_p, "b": b_p, "d_in": d_in, "d_out": d_out})
    return prepared


# ---------------------------------------------------------------------------
# Fused whole-MLP kernel: all layers in one pallas_call per batch tile.
# Weights of every layer stay resident in VMEM; intermediate activations
# never touch HBM.
# ---------------------------------------------------------------------------
def _fused_mlp_kernel(*refs, num_layers: int):
    """refs = (x_ref, w_0..w_{L-1}, b_0..b_{L-1}, o_ref).

    x_ref: [tm, k0_pad] bf16; w_l: [k_l_pad, n_l_pad] bf16; b_l: [1, n_l_pad]
    f32; o_ref: [tm, n_last_pad] out dtype."""
    x_ref = refs[0]
    w_refs = refs[1:1 + num_layers]
    b_refs = refs[1 + num_layers:1 + 2 * num_layers]
    o_ref = refs[1 + 2 * num_layers]

    h = x_ref[...]                                     # bf16 tile
    for l in range(num_layers):                        # static unroll (small L)
        y = jnp.dot(h, w_refs[l][...], preferred_element_type=jnp.float32)
        y = jnp.maximum(y + b_refs[l][...], 0.0)       # bias + ReLU in f32
        if l < num_layers - 1:
            h = y.astype(x_ref.dtype)                  # back to bf16 for MXU
        else:
            h = y                                      # keep f32, no bounce
    o_ref[...] = h.astype(o_ref.dtype)
    # TODO(synk): for very deep MLPs (uniform hidden dims) switch the static
    # unroll to lax.fori_loop over a packed weight slab to bound live ranges.


def mlp_forward_fused(x, prep, *, tm: int = 256, compute_dtype=jnp.bfloat16):
    n, d_in0 = x.shape
    num_layers = len(prep)
    k0_pad = prep[0]["w"].shape[0]
    n_last_pad = prep[-1]["w"].shape[1]

    tm_eff = min(tm, _round_up(n, 16))                 # bf16 sublane packing
    m_pad = _round_up(n, tm_eff)

    if (m_pad, k0_pad) == (n, d_in0) and x.dtype == compute_dtype:
        x_in = x
    else:
        x_in = jnp.zeros((m_pad, k0_pad), compute_dtype)
        x_in = x_in.at[:n, :d_in0].set(x.astype(compute_dtype))

    vmem_limit = _vmem_limit_bytes()
    kernel = functools.partial(_fused_mlp_kernel, num_layers=num_layers)
    w_list = [p["w"] for p in prep]
    b_list = [p["b"] for p in prep]

    def _const_spec(shape, single_buffer):
        nd = len(shape)
        if single_buffer:
            # Constant index_map -> no double buffer needed for resident data.
            return pl.BlockSpec(shape, lambda i: (0,) * nd,
                                pipeline_mode=pl.Buffered(1))
        return pl.BlockSpec(shape, lambda i: (0,) * nd)

    def call(single_buffer):
        in_specs = ([pl.BlockSpec((tm_eff, k0_pad), lambda i: (i, 0))]
                    + [_const_spec(w.shape, single_buffer) for w in w_list]
                    + [_const_spec(b.shape, single_buffer) for b in b_list])
        return pl.pallas_call(
            kernel,
            out_shape=jax.ShapeDtypeStruct((m_pad, n_last_pad), x.dtype),
            grid=(m_pad // tm_eff,),
            in_specs=in_specs,
            out_specs=pl.BlockSpec((tm_eff, n_last_pad), lambda i: (i, 0)),
            compiler_params=pltpu.CompilerParams(
                dimension_semantics=("parallel",),     # megacore over batch
                vmem_limit_bytes=vmem_limit),
        )(x_in, *w_list, *b_list)

    try:
        out = call(single_buffer=True)
    except Exception:
        # Older jax may reject Buffered(1); fall back to default buffering.
        out = call(single_buffer=False)

    return out[:n, :prep[-1]["d_out"]]


def _fused_vmem_estimate_bytes(n, prep, tm, out_itemsize=4):
    """Fused-path VMEM footprint: single-buffered weights/biases, double-
    buffered x/out tiles, f32 intermediates, plus compiler-scratch headroom."""
    tm_eff = min(tm, _round_up(n, 16))
    w_bytes = sum(int(p["w"].size) * p["w"].dtype.itemsize for p in prep)
    b_bytes = sum(int(p["b"].size) * 4 for p in prep)
    k0_pad = prep[0]["w"].shape[0]
    n_last_pad = prep[-1]["w"].shape[1]
    d_max = max(max(p["w"].shape) for p in prep)
    x_bytes = 2 * tm_eff * k0_pad * 2
    o_bytes = 2 * tm_eff * n_last_pad * out_itemsize
    inter_bytes = tm_eff * d_max * (4 + 4 + 2)         # f32 y (+copy) + bf16 h
    return w_bytes + b_bytes + x_bytes + o_bytes + inter_bytes + (2 << 20)


# ---------------------------------------------------------------------------
# Fallback: per-layer Linear(+ReLU) on padded bf16 activations.
#   * K <= 2048: single K block, no accumulator / no K grid axis.
#   * otherwise: (M, Dout, K) grid with f32 VMEM accumulator.
# ---------------------------------------------------------------------------
def _linear_noacc_kernel(x_ref, w_ref, b_ref, o_ref, *, apply_relu: bool):
    y = jnp.dot(x_ref[...], w_ref[...], preferred_element_type=jnp.float32)
    y = y + b_ref[...]
    if apply_relu:
        y = jnp.maximum(y, 0.0)
    o_ref[...] = y.astype(o_ref.dtype)


def _linear_acc_kernel(x_ref, w_ref, b_ref, o_ref, acc_ref, *,
                       apply_relu: bool):
    @pl.when(pl.program_id(2) == 0)
    def _():
        acc_ref[...] = jnp.zeros_like(acc_ref)

    acc_ref[...] += jnp.dot(x_ref[...], w_ref[...],
                            preferred_element_type=jnp.float32)

    @pl.when(pl.program_id(2) == pl.num_programs(2) - 1)
    def _():
        y = acc_ref[...] + b_ref[...]
        if apply_relu:
            y = jnp.maximum(y, 0.0)
        o_ref[...] = y.astype(o_ref.dtype)


def _linear_relu_padded(h, w_p, b_p, *, out_dtype, tm_eff, vmem_limit,
                        apply_relu=True, tn_cap=512, tk_cap=1024,
                        tk_full_max=2048):
    """h: [m_pad, k_pad] bf16 (already padded); w_p: [k_pad, n_pad] bf16;
    b_p: [1, n_pad] f32.  Returns padded [m_pad, n_pad] in out_dtype."""
    m_pad, k_pad = h.shape
    assert w_p.shape[0] == k_pad
    n_pad = w_p.shape[1]
    tn_eff = _pick_tile(n_pad, tn_cap)
    tk_eff = k_pad if k_pad <= tk_full_max else _pick_tile(k_pad, tk_cap)
    nm, nn, nk = m_pad // tm_eff, n_pad // tn_eff, k_pad // tk_eff

    if nk == 1:
        kernel = functools.partial(_linear_noacc_kernel, apply_relu=apply_relu)
        return pl.pallas_call(
            kernel,
            out_shape=jax.ShapeDtypeStruct((m_pad, n_pad), out_dtype),
            grid=(nm, nn),
            in_specs=[pl.BlockSpec((tm_eff, k_pad), lambda i, j: (i, 0)),
                      pl.BlockSpec((k_pad, tn_eff), lambda i, j: (0, j)),
                      pl.BlockSpec((1, tn_eff), lambda i, j: (0, j))],
            out_specs=pl.BlockSpec((tm_eff, tn_eff), lambda i, j: (i, j)),
            compiler_params=pltpu.CompilerParams(
                dimension_semantics=("parallel", "parallel"),
                vmem_limit_bytes=vmem_limit),
        )(h, w_p, b_p)

    kernel = functools.partial(_linear_acc_kernel, apply_relu=apply_relu)
    return pl.pallas_call(
        kernel,
        out_shape=jax.ShapeDtypeStruct((m_pad, n_pad), out_dtype),
        grid=(nm, nn, nk),
        in_specs=[pl.BlockSpec((tm_eff, tk_eff), lambda i, j, k: (i, k)),
                  pl.BlockSpec((tk_eff, tn_eff), lambda i, j, k: (k, j)),
                  pl.BlockSpec((1, tn_eff), lambda i, j, k: (0, j))],
        out_specs=pl.BlockSpec((tm_eff, tn_eff), lambda i, j, k: (i, j)),
        scratch_shapes=[pltpu.VMEM((tm_eff, tn_eff), jnp.float32)],
        compiler_params=pltpu.CompilerParams(
            dimension_semantics=("parallel", "parallel", "arbitrary"),
            vmem_limit_bytes=vmem_limit),
    )(h, w_p, b_p)


def mlp_forward_tiled(x, prep, *, tm: int = 512, compute_dtype=jnp.bfloat16):
    """Per-layer tiled path. Activations stay padded bf16 between layers (no
    per-layer slice / re-pad, halves the HBM activation round-trip)."""
    n, d_in0 = x.shape
    k0_pad = prep[0]["w"].shape[0]
    tm_eff = min(tm, _round_up(n, 16))
    m_pad = _round_up(n, tm_eff)
    vmem_limit = _vmem_limit_bytes()

    if (m_pad, k0_pad) == (n, d_in0) and x.dtype == compute_dtype:
        h = x
    else:
        h = jnp.zeros((m_pad, k0_pad), compute_dtype)
        h = h.at[:n, :d_in0].set(x.astype(compute_dtype))

    num_layers = len(prep)
    for l, p in enumerate(prep):
        last = (l == num_layers - 1)
        h = _linear_relu_padded(
            h, p["w"], p["b"],
            out_dtype=(x.dtype if last else compute_dtype),
            tm_eff=tm_eff, vmem_limit=vmem_limit, apply_relu=True)
    return h[:n, :prep[-1]["d_out"]]


# ---------------------------------------------------------------------------
# Parameter init + top-level forward
# ---------------------------------------------------------------------------
def init_mlp_params(key, input_dim, hidden_dim, embed_dim, num_layers):
    """PyTorch-Linear-style uniform init; weights stored as [in, out]."""
    params = []
    for i in range(num_layers):
        d_in = input_dim if i == 0 else hidden_dim
        d_out = embed_dim if i == num_layers - 1 else hidden_dim
        key, kw, kb = jax.random.split(key, 3)
        bound = 1.0 / (d_in ** 0.5)
        w = jax.random.uniform(kw, (d_in, d_out), jnp.float32, -bound, bound)
        b = jax.random.uniform(kb, (d_out,), jnp.float32, -bound, bound)
        params.append((w, b))
    return params


def mlp_forward(x, prep, *, use_fused=None, tm_fused: int = 256,
                tm_tiled: int = 512):
    """x: [N, input_dim]; prep from prepare_mlp_params().  Applies
    Linear+ReLU for every layer (end_up_with_fc=False default)."""
    # TODO(synk): BatchNorm1d path (bn=True) and non-ReLU activations not
    # implemented; module defaults are bn=False / act='ReLU'.
    if use_fused is None:
        limit = _vmem_limit_bytes()
        est = _fused_vmem_estimate_bytes(
            x.shape[0], prep, tm_fused, jnp.dtype(x.dtype).itemsize)
        use_fused = est <= int(0.70 * limit)
    if use_fused:
        return mlp_forward_fused(x, prep, tm=tm_fused)
    return mlp_forward_tiled(x, prep, tm=tm_tiled)


def mlp_reference(x, params):
    """Pure-JAX f32 reference for correctness check."""
    for (w, b) in params:
        x = jnp.maximum(x @ w + b, 0.0)
    return x


if __name__ == "__main__":
    # Small shapes: batch=8, input_dim=16, hidden_dim=32, embed_dim=24, 3 layers.
    N, INPUT_DIM, HIDDEN_DIM, EMBED_DIM, NUM_LAYERS = 8, 16, 32, 24, 3

    key = jax.random.PRNGKey(0)
    key, kx = jax.random.split(key)
    x = jax.random.normal(kx, (N, INPUT_DIM), jnp.float32)

    params = init_mlp_params(key, INPUT_DIM, HIDDEN_DIM, EMBED_DIM, NUM_LAYERS)
    prep = prepare_mlp_params(params)        # padding/casting hoisted here

    ref = mlp_reference(x, params)

    # Fused path (single pallas_call, weights resident, no HBM round-trips).
    out_fused = jax.block_until_ready(mlp_forward(x, prep, use_fused=True))
    # Tiled fallback path (exercised so both paths compile & run).
    out_tiled = jax.block_until_ready(mlp_forward(x, prep, use_fused=False))

    assert out_fused.shape == (N, EMBED_DIM), out_fused.shape
    assert out_tiled.shape == (N, EMBED_DIM), out_tiled.shape
    # bf16 compute with f32 accumulation -> loose-ish tolerance vs f32 ref.
    assert jnp.allclose(out_fused, ref, atol=5e-2, rtol=5e-2), "fused mismatch"
    assert jnp.allclose(out_tiled, ref, atol=5e-2, rtol=5e-2), "tiled mismatch"

    print("KERNEL_OK")
</pallas_src>

<mosaic_0001>
module attributes {stable_mosaic.version = 11 : i64} {
  func.func @_fused_mlp_kernel(%arg0: i32, %arg1: memref<16x128xbf16, #tpu.memory_space<vmem>>, %arg2: memref<128x128xbf16, #tpu.memory_space<vmem>>, %arg3: memref<128x128xbf16, #tpu.memory_space<vmem>>, %arg4: memref<128x128xbf16, #tpu.memory_space<vmem>>, %arg5: memref<1x128xf32, #tpu.memory_space<vmem>>, %arg6: memref<1x128xf32, #tpu.memory_space<vmem>>, %arg7: memref<1x128xf32, #tpu.memory_space<vmem>>, %arg8: memref<16x128xf32, #tpu.memory_space<vmem>>) attributes {dimension_semantics = [#tpu.dimension_semantics<parallel>], iteration_bounds = array<i64: 1>, scalar_prefetch = 0 : i64, scratch_operands = 0 : i64, tpu.core_type = #tpu.core_type<tc>, window_params = [{transform_indices = @transform_0, window_bounds = array<i64: 16, 128>}, {pipeline_mode = #tpu.pipeline_mode<synchronous>, transform_indices = @transform_1, window_bounds = array<i64: 128, 128>}, {pipeline_mode = #tpu.pipeline_mode<synchronous>, transform_indices = @transform_2, window_bounds = array<i64: 128, 128>}, {pipeline_mode = #tpu.pipeline_mode<synchronous>, transform_indices = @transform_3, window_bounds = array<i64: 128, 128>}, {pipeline_mode = #tpu.pipeline_mode<synchronous>, transform_indices = @transform_4, window_bounds = array<i64: 1, 128>}, {pipeline_mode = #tpu.pipeline_mode<synchronous>, transform_indices = @transform_5, window_bounds = array<i64: 1, 128>}, {pipeline_mode = #tpu.pipeline_mode<synchronous>, transform_indices = @transform_6, window_bounds = array<i64: 1, 128>}, {transform_indices = @transform_7, window_bounds = array<i64: 16, 128>}]} {
    %c0 = arith.constant 0 : index
    %c0_0 = arith.constant 0 : index
    %0 = vector.load %arg1[%c0, %c0_0] : memref<16x128xbf16, #tpu.memory_space<vmem>>, vector<16x128xbf16>
    %c0_1 = arith.constant 0 : index
    %c0_2 = arith.constant 0 : index
    %1 = vector.load %arg2[%c0_1, %c0_2] : memref<128x128xbf16, #tpu.memory_space<vmem>>, vector<128x128xbf16>
    %cst = arith.constant dense<0.000000e+00> : vector<16x128xf32>
    %2 = tpu.matmul %0, %1, %cst {dimension_numbers = #tpu.dot_dimension_numbers<[1], [0], [0], [1], [0, 0, 1, 1], [], []>} : vector<16x128xbf16>, vector<128x128xbf16>, vector<16x128xf32> -> vector<16x128xf32>
    %c0_3 = arith.constant 0 : index
    %c0_4 = arith.constant 0 : index
    %3 = vector.load %arg5[%c0_3, %c0_4] : memref<1x128xf32, #tpu.memory_space<vmem>>, vector<1x128xf32>
    %4 = vector.broadcast %3 : vector<1x128xf32> to vector<16x128xf32>
    %5 = arith.addf %2, %4 : vector<16x128xf32>
    %cst_5 = arith.constant 0.000000e+00 : f32
    %6 = vector.broadcast %cst_5 : f32 to vector<16x128xf32>
    %7 = arith.maximumf %5, %6 : vector<16x128xf32>
    %8 = arith.truncf %7 : vector<16x128xf32> to vector<16x128xbf16>
    %c0_6 = arith.constant 0 : index
    %c0_7 = arith.constant 0 : index
    %9 = vector.load %arg3[%c0_6, %c0_7] : memref<128x128xbf16, #tpu.memory_space<vmem>>, vector<128x128xbf16>
    %cst_8 = arith.constant dense<0.000000e+00> : vector<16x128xf32>
    %10 = tpu.matmul %8, %9, %cst_8 {dimension_numbers = #tpu.dot_dimension_numbers<[1], [0], [0], [1], [0, 0, 1, 1], [], []>} : vector<16x128xbf16>, vector<128x128xbf16>, vector<16x128xf32> -> vector<16x128xf32>
    %c0_9 = arith.constant 0 : index
    %c0_10 = arith.constant 0 : index
    %11 = vector.load %arg6[%c0_9, %c0_10] : memref<1x128xf32, #tpu.memory_space<vmem>>, vector<1x128xf32>
    %12 = vector.broadcast %11 : vector<1x128xf32> to vector<16x128xf32>
    %13 = arith.addf %10, %12 : vector<16x128xf32>
    %cst_11 = arith.constant 0.000000e+00 : f32
    %14 = vector.broadcast %cst_11 : f32 to vector<16x128xf32>
    %15 = arith.maximumf %13, %14 : vector<16x128xf32>
    %16 = arith.truncf %15 : vector<16x128xf32> to vector<16x128xbf16>
    %c0_12 = arith.constant 0 : index
    %c0_13 = arith.constant 0 : index
    %17 = vector.load %arg4[%c0_12, %c0_13] : memref<128x128xbf16, #tpu.memory_space<vmem>>, vector<128x128xbf16>
    %cst_14 = arith.constant dense<0.000000e+00> : vector<16x128xf32>
    %18 = tpu.matmul %16, %17, %cst_14 {dimension_numbers = #tpu.dot_dimension_numbers<[1], [0], [0], [1], [0, 0, 1, 1], [], []>} : vector<16x128xbf16>, vector<128x128xbf16>, vector<16x128xf32> -> vector<16x128xf32>
    %c0_15 = arith.constant 0 : index
    %c0_16 = arith.constant 0 : index
    %19 = vector.load %arg7[%c0_15, %c0_16] : memref<1x128xf32, #tpu.memory_space<vmem>>, vector<1x128xf32>
    %20 = vector.broadcast %19 : vector<1x128xf32> to vector<16x128xf32>
    %21 = arith.addf %18, %20 : vector<16x128xf32>
    %cst_17 = arith.constant 0.000000e+00 : f32
    %22 = vector.broadcast %cst_17 : f32 to vector<16x128xf32>
    %23 = arith.maximumf %21, %22 : vector<16x128xf32>
    %c0_18 = arith.constant 0 : index
    %c0_19 = arith.constant 0 : index
    %24 = vector.load %arg8[%c0_18, %c0_19] : memref<16x128xf32, #tpu.memory_space<vmem>>, vector<16x128xf32>
    tpu.vector_store %arg8[%c0_18, %c0_19], %23 {strides = array<i32>} : memref<16x128xf32, #tpu.memory_space<vmem>>, vector<16x128xf32>,
    return
  }
  func.func @transform_0(%arg0: i32) -> (i32, i32) {
    %c0_i32 = arith.constant 0 : i32
    %c0_i32_0 = arith.constant 0 : i32
    return %arg0, %c0_i32 : i32, i32
  }
  func.func @transform_1(%arg0: i32) -> (i32, i32) {
    %c0_i32 = arith.constant 0 : i32
    %c0_i32_0 = arith.constant 0 : i32
    %c0_i32_1 = arith.constant 0 : i32
    return %c0_i32, %c0_i32_0 : i32, i32
  }
  func.func @transform_2(%arg0: i32) -> (i32, i32) {
    %c0_i32 = arith.constant 0 : i32
    %c0_i32_0 = arith.constant 0 : i32
    %c0_i32_1 = arith.constant 0 : i32
    return %c0_i32, %c0_i32_0 : i32, i32
  }
  func.func @transform_3(%arg0: i32) -> (i32, i32) {
    %c0_i32 = arith.constant 0 : i32
    %c0_i32_0 = arith.constant 0 : i32
    %c0_i32_1 = arith.constant 0 : i32
    return %c0_i32, %c0_i32_0 : i32, i32
  }
  func.func @transform_4(%arg0: i32) -> (i32, i32) {
    %c0_i32 = arith.constant 0 : i32
    %c0_i32_0 = arith.constant 0 : i32
    %c0_i32_1 = arith.constant 0 : i32
    return %c0_i32, %c0_i32_0 : i32, i32
  }
  func.func @transform_5(%arg0: i32) -> (i32, i32) {
    %c0_i32 = arith.constant 0 : i32
    %c0_i32_0 = arith.constant 0 : i32
    %c0_i32_1 = arith.constant 0 : i32
    return %c0_i32, %c0_i32_0 : i32, i32
  }
  func.func @transform_6(%arg0: i32) -> (i32, i32) {
    %c0_i32 = arith.constant 0 : i32
    %c0_i32_0 = arith.constant 0 : i32
    %c0_i32_1 = arith.constant 0 : i32
    return %c0_i32, %c0_i32_0 : i32, i32
  }
  func.func @transform_7(%arg0: i32) -> (i32, i32) {
    %c0_i32 = arith.constant 0 : i32
    %c0_i32_0 = arith.constant 0 : i32
    return %arg0, %c0_i32 : i32, i32
  }
}

module attributes {stable_mosaic.version = 11 : i64} {
  func.func @_fused_mlp_kernel(%arg0: i32, %arg1: memref<16x128xbf16, #tpu.memory_space<vmem>>, %arg2: memref<128x128xbf16, #tpu.memory_space<vmem>>, %arg3: memref<128x128xbf16, #tpu.memory_space<vmem>>, %arg4: memref<128x128xbf16, #tpu.memory_space<vmem>>, %arg5: memref<1x128xf32, #tpu.memory_space<vmem>>, %arg6: memref<1x128xf32, #tpu.memory_space<vmem>>, %arg7: memref<1x128xf32, #tpu.memory_space<vmem>>, %arg8: memref<16x128xf32, #tpu.memory_space<vmem>>) attributes {dimension_semantics = [#tpu.dimension_semantics<parallel>], iteration_bounds = array<i64: 1>, scalar_prefetch = 0 : i64, scratch_operands = 0 : i64, tpu.core_type = #tpu.core_type<tc>, window_params = [{transform_indices = @transform_0, window_bounds = array<i64: 16, 128>}, {pipeline_mode = #tpu.pipeline_mode<synchronous>, transform_indices = @transform_1, window_bounds = array<i64: 128, 128>}, {pipeline_mode = #tpu.pipeline_mode<synchronous>, transform_indices = @transform_2, window_bounds = array<i64: 128, 128>}, {pipeline_mode = #tpu.pipeline_mode<synchronous>, transform_indices = @transform_3, window_bounds = array<i64: 128, 128>}, {pipeline_mode = #tpu.pipeline_mode<synchronous>, transform_indices = @transform_4, window_bounds = array<i64: 1, 128>}, {pipeline_mode = #tpu.pipeline_mode<synchronous>, transform_indices = @transform_5, window_bounds = array<i64: 1, 128>}, {pipeline_mode = #tpu.pipeline_mode<synchronous>, transform_indices = @transform_6, window_bounds = array<i64: 1, 128>}, {transform_indices = @transform_7, window_bounds = array<i64: 16, 128>}]} {
    %c0 = arith.constant 0 : index
    %c0_0 = arith.constant 0 : index
    %0 = vector.load %arg1[%c0, %c0_0] : memref<16x128xbf16, #tpu.memory_space<vmem>>, vector<16x128xbf16>
    %c0_1 = arith.constant 0 : index
    %c0_2 = arith.constant 0 : index
    %1 = vector.load %arg2[%c0_1, %c0_2] : memref<128x128xbf16, #tpu.memory_space<vmem>>, vector<128x128xbf16>
    %cst = arith.constant dense<0.000000e+00> : vector<16x128xf32>
    %2 = tpu.matmul %0, %1, %cst {dimension_numbers = #tpu.dot_dimension_numbers<[1], [0], [0], [1], [0, 0, 1, 1], [], []>} : vector<16x128xbf16>, vector<128x128xbf16>, vector<16x128xf32> -> vector<16x128xf32>
    %c0_3 = arith.constant 0 : index
    %c0_4 = arith.constant 0 : index
    %3 = vector.load %arg5[%c0_3, %c0_4] : memref<1x128xf32, #tpu.memory_space<vmem>>, vector<1x128xf32>
    %4 = vector.broadcast %3 : vector<1x128xf32> to vector<16x128xf32>
    %5 = arith.addf %2, %4 : vector<16x128xf32>
    %cst_5 = arith.constant 0.000000e+00 : f32
    %6 = vector.broadcast %cst_5 : f32 to vector<16x128xf32>
    %7 = arith.maximumf %5, %6 : vector<16x128xf32>
    %8 = arith.truncf %7 : vector<16x128xf32> to vector<16x128xbf16>
    %c0_6 = arith.constant 0 : index
    %c0_7 = arith.constant 0 : index
    %9 = vector.load %arg3[%c0_6, %c0_7] : memref<128x128xbf16, #tpu.memory_space<vmem>>, vector<128x128xbf16>
    %cst_8 = arith.constant dense<0.000000e+00> : vector<16x128xf32>
    %10 = tpu.matmul %8, %9, %cst_8 {dimension_numbers = #tpu.dot_dimension_numbers<[1], [0], [0], [1], [0, 0, 1, 1], [], []>} : vector<16x128xbf16>, vector<128x128xbf16>, vector<16x128xf32> -> vector<16x128xf32>
    %c0_9 = arith.constant 0 : index
    %c0_10 = arith.constant 0 : index
    %11 = vector.load %arg6[%c0_9, %c0_10] : memref<1x128xf32, #tpu.memory_space<vmem>>, vector<1x128xf32>
    %12 = vector.broadcast %11 : vector<1x128xf32> to vector<16x128xf32>
    %13 = arith.addf %10, %12 : vector<16x128xf32>
    %cst_11 = arith.constant 0.000000e+00 : f32
    %14 = vector.broadcast %cst_11 : f32 to vector<16x128xf32>
    %15 = arith.maximumf %13, %14 : vector<16x128xf32>
    %16 = arith.truncf %15 : vector<16x128xf32> to vector<16x128xbf16>
    %c0_12 = arith.constant 0 : index
    %c0_13 = arith.constant 0 : index
    %17 = vector.load %arg4[%c0_12, %c0_13] : memref<128x128xbf16, #tpu.memory_space<vmem>>, vector<128x128xbf16>
    %cst_14 = arith.constant dense<0.000000e+00> : vector<16x128xf32>
    %18 = tpu.matmul %16, %17, %cst_14 {dimension_numbers = #tpu.dot_dimension_numbers<[1], [0], [0], [1], [0, 0, 1, 1], [], []>} : vector<16x128xbf16>, vector<128x128xbf16>, vector<16x128xf32> -> vector<16x128xf32>
    %c0_15 = arith.constant 0 : index
    %c0_16 = arith.constant 0 : index
    %19 = vector.load %arg7[%c0_15, %c0_16] : memref<1x128xf32, #tpu.memory_space<vmem>>, vector<1x128xf32>
    %20 = vector.broadcast %19 : vector<1x128xf32> to vector<16x128xf32>
    %21 = arith.addf %18, %20 : vector<16x128xf32>
    %cst_17 = arith.constant 0.000000e+00 : f32
    %22 = vector.broadcast %cst_17 : f32 to vector<16x128xf32>
    %23 = arith.maximumf %21, %22 : vector<16x128xf32>
    %c0_18 = arith.constant 0 : index
    %c0_19 = arith.constant 0 : index
    %24 = vector.load %arg8[%c0_18, %c0_19] : memref<16x128xf32, #tpu.memory_space<vmem>>, vector<16x128xf32>
    tpu.vector_store %arg8[%c0_18, %c0_19], %23 {strides = array<i32>} : memref<16x128xf32, #tpu.memory_space<vmem>>, vector<16x128xf32>,
    return
  }
  func.func @transform_0(%arg0: i32) -> (i32, i32) {
    %c0_i32 = arith.constant 0 : i32
    %c0_i32_0 = arith.constant 0 : i32
    return %arg0, %c0_i32 : i32, i32
  }
  func.func @transform_1(%arg0: i32) -> (i32, i32) {
    %c0_i32 = arith.constant 0 : i32
    %c0_i32_0 = arith.constant 0 : i32
    %c0_i32_1 = arith.constant 0 : i32
    return %c0_i32, %c0_i32_0 : i32, i32
  }
  func.func @transform_2(%arg0: i32) -> (i32, i32) {
    %c0_i32 = arith.constant 0 : i32
    %c0_i32_0 = arith.constant 0 : i32
    %c0_i32_1 = arith.constant 0 : i32
    return %c0_i32, %c0_i32_0 : i32, i32
  }
  func.func @transform_3(%arg0: i32) -> (i32, i32) {
    %c0_i32 = arith.constant 0 : i32
    %c0_i32_0 = arith.constant 0 : i32
    %c0_i32_1 = arith.constant 0 : i32
    return %c0_i32, %c0_i32_0 : i32, i32
  }
  func.func @transform_4(%arg0: i32) -> (i32, i32) {
    %c0_i32 = arith.constant 0 : i32
    %c0_i32_0 = arith.constant 0 : i32
    %c0_i32_1 = arith.constant 0 : i32
    return %c0_i32, %c0_i32_0 : i32, i32
  }
  func.func @transform_5(%arg0: i32) -> (i32, i32) {
    %c0_i32 = arith.constant 0 : i32
    %c0_i32_0 = arith.constant 0 : i32
    %c0_i32_1 = arith.constant 0 : i32
    return %c0_i32, %c0_i32_0 : i32, i32
  }
  func.func @transform_6(%arg0: i32) -> (i32, i32) {
    %c0_i32 = arith.constant 0 : i32
    %c0_i32_0 = arith.constant 0 : i32
    %c0_i32_1 = arith.constant 0 : i32
    return %c0_i32, %c0_i32_0 : i32, i32
  }
  func.func @transform_7(%arg0: i32) -> (i32, i32) {
    %c0_i32 = arith.constant 0 : i32
    %c0_i32_0 = arith.constant 0 : i32
    return %arg0, %c0_i32 : i32, i32
  }
}

</mosaic_0001>

<bundles_post_ra>
// kernel: tpu_custom_call.1
= control target key start
LH: loop header
LB: loop body
LE: loop exit
PB: predicated region body
PF: predicated region fallthrough
CT: control target
= control target key end

     0   :  { %12 = vsyncpa [#allocation3], 0  ;;  %s713_s0 = inlined_call_operand.hbm [shape: bf16[16,128], index: 0, kind: input, shape index: {}]   ;;  %s714_s1 = inlined_call_operand.hbm [shape: bf16[128,128], index: 1, kind: input, shape index: {}]   ;;  %s715_s2 = inlined_call_operand.hbm [shape: bf16[128,128], index: 2, kind: input, shape index: {}]   ;;  %s716_s3 = inlined_call_operand.hbm [shape: bf16[128,128], index: 3, kind: input, shape index: {}]   ;;  %s717_s4 = inlined_call_operand.vmem [shape: f32[1,128], index: 4, kind: input, shape index: {}]   ;;  %s718_s5 = inlined_call_operand.vmem [shape: f32[1,128], index: 5, kind: input, shape index: {}]   ;;  %s719_s6 = inlined_call_operand.vmem [shape: f32[1,128], index: 6, kind: input, shape index: {}]   ;;  %s720_s7 = inlined_call_operand.hbm [shape: f32[16,128], index: 7, kind: output, shape index: {}]  }
   0x1   :  { %13 = vsyncpa [#allocation6], 0 }
   0x2   :  { %14 = vsyncpa [#allocation9], 0 }
   0x3   :  { %15 = vsyncpa [#allocation4], 0  ;;  %s33_s26 = sshll.u32 %s714_s1, 4  ;;  %s640_s27 = smov [#allocation5]   ;;  %s34_s26 = int_to_ptr.hbm [resolvable:$true] %s33_s26 }
   0x4   :  { %s35_s28 = sshll.u32 %s640_s27, 4  ;;  %s20_s8 = sshll.u32 %s713_s0, 4  ;;  %s36_s28 = int_to_ptr.vmem [resolvable:$true] %s35_s28  ;;  %s21_s8 = int_to_ptr.hbm [resolvable:$true] %s20_s8 }
   0x5   :  { %s641_s9 = smov 64   ;;  %s642_s10 = smov 4  }
   0x6   :  { %41 = dma.hbm_to_vmem [thread:$0]  %s34_s26, 1024, %s36_s28, [#allocation6], %s641_s9, %s641_s9, %s642_s10  }
   0x7   :  { %s643_s11 = smov [#allocation2]   ;;  %s46_s15 = sshll.u32 %s715_s2, 4  ;;  %s47_s15 = int_to_ptr.hbm [resolvable:$true] %s46_s15 }
   0x8   :  { %s22_s12 = sshll.u32 %s643_s11, 4  ;;  %s59_s17 = sshll.u32 %s716_s3, 4  ;;  %s23_s12 = int_to_ptr.vmem [resolvable:$true] %s22_s12  ;;  %s60_s17 = int_to_ptr.hbm [resolvable:$true] %s59_s17 }
   0x9   :  { %28 = dma.hbm_to_vmem [thread:$0]  %s21_s8, 128, %s23_s12, [#allocation3], %s641_s9, %s641_s9, %s642_s10  }
   0xa   :  { %s644_s18 = smov [#allocation7]   ;;  %s645_s0 = smov [#allocation8]  }
   0xb   :  { %s48_s19 = sshll.u32 %s644_s18, 4  ;;  %s61_s20 = sshll.u32 %s645_s0, 4  ;;  %s49_s19 = int_to_ptr.vmem [resolvable:$true] %s48_s19  ;;  %s62_s20 = int_to_ptr.vmem [resolvable:$true] %s61_s20 }
   0xc   :  { %54 = dma.hbm_to_vmem [thread:$0]  %s47_s15, 1024, %s49_s19, [#allocation6], %s641_s9, %s641_s9, %s642_s10  }
   0xd   :  { %67 = dma.hbm_to_vmem [thread:$0]  %s60_s17, 1024, %s62_s20, [#allocation9], %s641_s9, %s641_s9, %s642_s10  }
   0xe   :  { %632 = dma.done.wait [#allocation3], 128  }
   0xf   :  { %633 = vsyncadd [#allocation3], 4294967168 }
  0x10   :  { %634 = dma.done.wait [#allocation6], 2048  }
  0x11   :  { %635 = vsyncadd [#allocation6], 4294965248 }
  0x12   :  { %636 = dma.done.wait [#allocation9], 1024  }
  0x13   :  { %637 = vsyncadd [#allocation9], 4294966272  ;;  %v483_v0 = vld [vmem:[#allocation5 + $0x38] sm:$0xff]  ;;  %v482_v1 = vld [vmem:[#allocation5 + $0x30] sm:$0xff]  ;;  %s646_s24 = smov [#allocation10]   ;;  %s647_s28 = smov 128  }
  0x14   :  { %166 = vmatpush.bf16.msra.mxu0 %v483_v0  ;;  %v491_v2 = vld [vmem:[#allocation7 + $0x38] sm:$0xff]  ;;  %v490_v3 = vld [vmem:[#allocation7 + $0x30] sm:$0xff]  ;;  %v481_v4 = vld [vmem:[#allocation5 + $0x28] sm:$0xff]  ;;  %s358_s25 = sshll.u32 %s646_s24, 4  ;;  %s648_s29 = smov 8   ;;  %s359_s25 = int_to_ptr.vmem [resolvable:$true] %s358_s25 }
  0x15   :  { %251 = vmatpush.bf16.msra.mxu1 %v491_v2  ;;  %v489_v5 = vld [vmem:[#allocation7 + $0x28] sm:$0xff]  ;;  %v480_v6 = vld [vmem:[#allocation5 + $0x20] sm:$0xff]  ;;  %v479_v8 = vld [vmem:[#allocation5 + $0x18] sm:$0xff] }
  0x16   :  { %v488_v7 = vld [vmem:[#allocation7 + $0x20] sm:$0xff]  ;;  %v478_v9 = vld [vmem:[#allocation5 + $0x10] sm:$0xff]  ;;  %v477_v10 = vld [vmem:[#allocation5 + $0x8] sm:$0xff] }
  0x17   :  { %v476_v11 = vld [vmem:[#allocation5] sm:$0xff]  ;;  %v475_v12 = vld [vmem:[#allocation2] sm:$0xff]  ;;  %v486_v14 = vld [vmem:[#allocation7 + $0x10] sm:$0xff] }
  0x18   :  { %167 = vmatpush.bf16.msra.mxu0 %v482_v1  ;;  %v487_v13 = vld [vmem:[#allocation7 + $0x18] sm:$0xff]  ;;  %v485_v15 = vld [vmem:[#allocation7 + $0x8] sm:$0xff]  ;;  %v484_v16 = vld [vmem:[#allocation7] sm:$0xff] }
  0x19   :  { %252 = vmatpush.bf16.msra.mxu1 %v490_v3  ;;  %v499_v17 = vld [vmem:[#allocation8 + $0x38] sm:$0xff]  ;;  %v498_v18 = vld [vmem:[#allocation8 + $0x30] sm:$0xff]  ;;  %v497_v19 = vld [vmem:[#allocation8 + $0x28] sm:$0xff] }
  0x1a   :  { %336 = vmatpush.bf16.msra.mxu2 %v499_v17  ;;  %v496_v20 = vld [vmem:[#allocation8 + $0x20] sm:$0xff]  ;;  %v509_v22 = vld [vmem:[%s717_s4] ss:$0 sm:$0xff]  ;;  %v494_v30 = vld [vmem:[#allocation8 + $0x10] sm:$0xff] }
  0x1b   :  { %v495_v29 = vld [vmem:[#allocation8 + $0x18] sm:$0xff]  ;;  %v493_v31 = vld [vmem:[#allocation8 + $0x8] sm:$0xff]  ;;  %v492_v32 = vld [vmem:[#allocation8] sm:$0xff] }
  0x1c   :  { %168 = vmatpush.bf16.msra.mxu0 %v481_v4  ;;  %v510_v34 = vld [vmem:[%s718_s5] ss:$0 sm:$0xff]  ;;  %s360_s5 = sshll.u32 %s720_s7, 4  ;;  %s361_s5 = int_to_ptr.hbm [resolvable:$true] %s360_s5 }
  0x1d   :  { %253 = vmatpush.bf16.msra.mxu1 %v489_v5  ;;  %v511_v41 = vld [vmem:[%s719_s6] ss:$0 sm:$0xff] }
  0x1e   :  { %337 = vmatpush.bf16.msra.mxu2 %v498_v18 }
  0x20   :  { %169 = vmatpush.bf16.msra.mxu0 %v480_v6 }
  0x21   :  { %254 = vmatpush.bf16.msra.mxu1 %v488_v7 }
  0x22   :  { %338 = vmatpush.bf16.msra.mxu2 %v497_v19 }
  0x24   :  { %170 = vmatpush.bf16.msra.mxu0 %v479_v8 }
  0x25   :  { %255 = vmatpush.bf16.msra.mxu1 %v487_v13 }
  0x26   :  { %339 = vmatpush.bf16.msra.mxu2 %v496_v20 }
  0x28   :  { %171 = vmatpush.bf16.msra.mxu0 %v478_v9 }
  0x29   :  { %256 = vmatpush.bf16.msra.mxu1 %v486_v14 }
  0x2a   :  { %340 = vmatpush.bf16.msra.mxu2 %v495_v29 }
  0x2c   :  { %172 = vmatpush.bf16.msra.mxu0 %v477_v10 }
  0x2d   :  { %257 = vmatpush.bf16.msra.mxu1 %v485_v15 }
  0x2e   :  { %341 = vmatpush.bf16.msra.mxu2 %v494_v30 }
  0x30   :  { %173 = vmatpush.bf16.msra.mxu0 %v476_v11 }
  0x31   :  { %258 = vmatpush.bf16.msra.mxu1 %v484_v16 }
  0x32   :  { %342 = vmatpush.bf16.msra.mxu2 %v493_v31 }
  0x33   :  { %174 = vmatmul.bf16.vlgmr.msra.gmra.mxu0 %v475_v12 }
  0x36   :  { %343 = vmatpush.bf16.msra.mxu2 %v492_v32 }
  0xb0   :  { %v175_v21 = vpop.f32.mrf.mxu0 }
  0xb1   :  { %v176_v23 = vadd.f32 %v509_v22, %v175_v21 }
  0xb3   :  { %v180_v26 = vmax.f32 %v176_v23, 0.0 }
  0xb8   :  { %v177_v24 = vpop.f32.mrf.mxu0 }
  0xb9   :  { %v178_v25 = vadd.f32 %v509_v22, %v177_v24 }
  0xbb   :  { %v181_v27 = vmax.f32 %v178_v25, 0.0 }
  0xbd   :  { %v182_v28 = vpack.c.bf16 %v181_v27, %v180_v26 }
  0xbf   :  { %259 = vmatmul.bf16.vlgmr.msra.gmra.mxu1 %v182_v28 }
 0x13c   :  { %v260_v33 = vpop.f32.mrf.mxu1 }
 0x13d   :  { %v261_v35 = vadd.f32 %v510_v34, %v260_v33 }
 0x13f   :  { %v265_v38 = vmax.f32 %v261_v35, 0.0 }
 0x144   :  { %v262_v36 = vpop.f32.mrf.mxu1 }
 0x145   :  { %v263_v37 = vadd.f32 %v510_v34, %v262_v36 }
 0x147   :  { %v266_v39 = vmax.f32 %v263_v37, 0.0 }
 0x149   :  { %v267_v40 = vpack.c.bf16 %v266_v39, %v265_v38 }
 0x14b   :  { %344 = vmatmul.bf16.vlgmr.msra.gmra.mxu2 %v267_v40 }
 0x1ce   :  { %v345_v42 = vpop.f32.mrf.mxu2 }
 0x1cf   :  { %v346_v43 = vadd.f32 %v511_v41, %v345_v42 }
 0x1d1   :  { %v350_v44 = vmax.f32 %v346_v43, 0.0 }
 0x1d3   :  { %352 = vst [vmem:[#allocation10] sm:$0xff] %v350_v44 }
 0x1d6   :  { %v347_v45 = vpop.f32.mrf.mxu2 }
 0x1d7   :  { %v348_v46 = vadd.f32 %v511_v41, %v347_v45 }
 0x1d9   :  { %v351_v47 = vmax.f32 %v348_v46, 0.0 }
 0x1db   :  { %353 = vst [vmem:[#allocation10 + $0x8] sm:$0xff] %v351_v47 }
 0x1dc   :  { %366 = dma.vmem_to_hbm [thread:$0]  %s359_s25, 256, %s361_s5, [#allocation4], %s647_s28, %s647_s28, %s648_s29  }
 0x1dd   :  { %638 = dma.done.wait [#allocation4], 256  }
 0x1de   :  { %639 = vsyncadd [#allocation4], 4294967040 }
 0x1df   :  { %371 = vsyncpa [#allocation3], 1 }
 0x1e0   :  { %372 = vsyncpa [#allocation6], 1 }
 0x1e1   :  { %373 = vsyncpa [#allocation9], 1 }
 0x1e2   :  { %374 = vsyncpa [#allocation4], 1 }

// kernel: tpu_custom_call.1
= control target key start
LH: loop header
LB: loop body
LE: loop exit
PB: predicated region body
PF: predicated region fallthrough
CT: control target
= control target key end

     0   :  { %12 = vsyncpa [#allocation3], 0  ;;  %s713_s0 = inlined_call_operand.hbm [shape: bf16[16,128], index: 0, kind: input, shape index: {}]   ;;  %s714_s1 = inlined_call_operand.hbm [shape: bf16[128,128], index: 1, kind: input, shape index: {}]   ;;  %s715_s2 = inlined_call_operand.hbm [shape: bf16[128,128], index: 2, kind: input, shape index: {}]   ;;  %s716_s3 = inlined_call_operand.hbm [shape: bf16[128,128], index: 3, kind: input, shape index: {}]   ;;  %s717_s4 = inlined_call_operand.vmem [shape: f32[1,128], index: 4, kind: input, shape index: {}]   ;;  %s718_s5 = inlined_call_operand.vmem [shape: f32[1,128], index: 5, kind: input, shape index: {}]   ;;  %s719_s6 = inlined_call_operand.vmem [shape: f32[1,128], index: 6, kind: input, shape index: {}]   ;;  %s720_s7 = inlined_call_operand.hbm [shape: f32[16,128], index: 7, kind: output, shape index: {}]  }
   0x1   :  { %13 = vsyncpa [#allocation6], 0 }
   0x2   :  { %14 = vsyncpa [#allocation9], 0 }
   0x3   :  { %15 = vsyncpa [#allocation4], 0  ;;  %s33_s26 = sshll.u32 %s714_s1, 4  ;;  %s640_s27 = smov [#allocation5]   ;;  %s34_s26 = int_to_ptr.hbm [resolvable:$true] %s33_s26 }
   0x4   :  { %s35_s28 = sshll.u32 %s640_s27, 4  ;;  %s20_s8 = sshll.u32 %s713_s0, 4  ;;  %s36_s28 = int_to_ptr.vmem [resolvable:$true] %s35_s28  ;;  %s21_s8 = int_to_ptr.hbm [resolvable:$true] %s20_s8 }
   0x5   :  { %s641_s9 = smov 64   ;;  %s642_s10 = smov 4  }
   0x6   :  { %41 = dma.hbm_to_vmem [thread:$0]  %s34_s26, 1024, %s36_s28, [#allocation6], %s641_s9, %s641_s9, %s642_s10  }
   0x7   :  { %s643_s11 = smov [#allocation2]   ;;  %s46_s15 = sshll.u32 %s715_s2, 4  ;;  %s47_s15 = int_to_ptr.hbm [resolvable:$true] %s46_s15 }
   0x8   :  { %s22_s12 = sshll.u32 %s643_s11, 4  ;;  %s59_s17 = sshll.u32 %s716_s3, 4  ;;  %s23_s12 = int_to_ptr.vmem [resolvable:$true] %s22_s12  ;;  %s60_s17 = int_to_ptr.hbm [resolvable:$true] %s59_s17 }
   0x9   :  { %28 = dma.hbm_to_vmem [thread:$0]  %s21_s8, 128, %s23_s12, [#allocation3], %s641_s9, %s641_s9, %s642_s10  }
   0xa   :  { %s644_s18 = smov [#allocation7]   ;;  %s645_s0 = smov [#allocation8]  }
   0xb   :  { %s48_s19 = sshll.u32 %s644_s18, 4  ;;  %s61_s20 = sshll.u32 %s645_s0, 4  ;;  %s49_s19 = int_to_ptr.vmem [resolvable:$true] %s48_s19  ;;  %s62_s20 = int_to_ptr.vmem [resolvable:$true] %s61_s20 }
   0xc   :  { %54 = dma.hbm_to_vmem [thread:$0]  %s47_s15, 1024, %s49_s19, [#allocation6], %s641_s9, %s641_s9, %s642_s10  }
   0xd   :  { %67 = dma.hbm_to_vmem [thread:$0]  %s60_s17, 1024, %s62_s20, [#allocation9], %s641_s9, %s641_s9, %s642_s10  }
   0xe   :  { %632 = dma.done.wait [#allocation3], 128  }
   0xf   :  { %633 = vsyncadd [#allocation3], 4294967168 }
  0x10   :  { %634 = dma.done.wait [#allocation6], 2048  }
  0x11   :  { %635 = vsyncadd [#allocation6], 4294965248 }
  0x12   :  { %636 = dma.done.wait [#allocation9], 1024  }
  0x13   :  { %637 = vsyncadd [#allocation9], 4294966272  ;;  %v483_v0 = vld [vmem:[#allocation5 + $0x38] sm:$0xff]  ;;  %v482_v1 = vld [vmem:[#allocation5 + $0x30] sm:$0xff]  ;;  %s646_s24 = smov [#allocation10]   ;;  %s647_s28 = smov 128  }
  0x14   :  { %166 = vmatpush.bf16.msra.mxu0 %v483_v0  ;;  %v491_v2 = vld [vmem:[#allocation7 + $0x38] sm:$0xff]  ;;  %v490_v3 = vld [vmem:[#allocation7 + $0x30] sm:$0xff]  ;;  %v481_v4 = vld [vmem:[#allocation5 + $0x28] sm:$0xff]  ;;  %s358_s25 = sshll.u32 %s646_s24, 4  ;;  %s648_s29 = smov 8   ;;  %s359_s25 = int_to_ptr.vmem [resolvable:$true] %s358_s25 }
  0x15   :  { %251 = vmatpush.bf16.msra.mxu1 %v491_v2  ;;  %v489_v5 = vld [vmem:[#allocation7 + $0x28] sm:$0xff]  ;;  %v480_v6 = vld [vmem:[#allocation5 + $0x20] sm:$0xff]  ;;  %v479_v8 = vld [vmem:[#allocation5 + $0x18] sm:$0xff] }
  0x16   :  { %v488_v7 = vld [vmem:[#allocation7 + $0x20] sm:$0xff]  ;;  %v478_v9 = vld [vmem:[#allocation5 + $0x10] sm:$0xff]  ;;  %v477_v10 = vld [vmem:[#allocation5 + $0x8] sm:$0xff] }
  0x17   :  { %v476_v11 = vld [vmem:[#allocation5] sm:$0xff]  ;;  %v475_v12 = vld [vmem:[#allocation2] sm:$0xff]  ;;  %v486_v14 = vld [vmem:[#allocation7 + $0x10] sm:$0xff] }
  0x18   :  { %167 = vmatpush.bf16.msra.mxu0 %v482_v1  ;;  %v487_v13 = vld [vmem:[#allocation7 + $0x18] sm:$0xff]  ;;  %v485_v15 = vld [vmem:[#allocation7 + $0x8] sm:$0xff]  ;;  %v484_v16 = vld [vmem:[#allocation7] sm:$0xff] }
  0x19   :  { %252 = vmatpush.bf16.msra.mxu1 %v490_v3  ;;  %v499_v17 = vld [vmem:[#allocation8 + $0x38] sm:$0xff]  ;;  %v498_v18 = vld [vmem:[#allocation8 + $0x30] sm:$0xff]  ;;  %v497_v19 = vld [vmem:[#allocation8 + $0x28] sm:$0xff] }
  0x1a   :  { %336 = vmatpush.bf16.msra.mxu2 %v499_v17  ;;  %v496_v20 = vld [vmem:[#allocation8 + $0x20] sm:$0xff]  ;;  %v509_v22 = vld [vmem:[%s717_s4] ss:$0 sm:$0xff]  ;;  %v494_v30 = vld [vmem:[#allocation8 + $0x10] sm:$0xff] }
  0x1b   :  { %v495_v29 = vld [vmem:[#allocation8 + $0x18] sm:$0xff]  ;;  %v493_v31 = vld [vmem:[#allocation8 + $0x8] sm:$0xff]  ;;  %v492_v32 = vld [vmem:[#allocation8] sm:$0xff] }
  0x1c   :  { %168 = vmatpush.bf16.msra.mxu0 %v481_v4  ;;  %v510_v34 = vld [vmem:[%s718_s5] ss:$0 sm:$0xff]  ;;  %s360_s5 = sshll.u32 %s720_s7, 4  ;;  %s361_s5 = int_to_ptr.hbm [resolvable:$true] %s360_s5 }
  0x1d   :  { %253 = vmatpush.bf16.msra.mxu1 %v489_v5  ;;  %v511_v41 = vld [vmem:[%s719_s6] ss:$0 sm:$0xff] }
  0x1e   :  { %337 = vmatpush.bf16.msra.mxu2 %v498_v18 }
  0x20   :  { %169 = vmatpush.bf16.msra.mxu0 %v480_v6 }
  0x21   :  { %254 = vmatpush.bf16.msra.mxu1 %v488_v7 }
  0x22   :  { %338 = vmatpush.bf16.msra.mxu2 %v497_v19 }
  0x24   :  { %170 = vmatpush.bf16.msra.mxu0 %v479_v8 }
  0x25   :  { %255 = vmatpush.bf16.msra.mxu1 %v487_v13 }
  0x26   :  { %339 = vmatpush.bf16.msra.mxu2 %v496_v20 }
  0x28   :  { %171 = vmatpush.bf16.msra.mxu0 %v478_v9 }
  0x29   :  { %256 = vmatpush.bf16.msra.mxu1 %v486_v14 }
  0x2a   :  { %340 = vmatpush.bf16.msra.mxu2 %v495_v29 }
  0x2c   :  { %172 = vmatpush.bf16.msra.mxu0 %v477_v10 }
  0x2d   :  { %257 = vmatpush.bf16.msra.mxu1 %v485_v15 }
  0x2e   :  { %341 = vmatpush.bf16.msra.mxu2 %v494_v30 }
  0x30   :  { %173 = vmatpush.bf16.msra.mxu0 %v476_v11 }
  0x31   :  { %258 = vmatpush.bf16.msra.mxu1 %v484_v16 }
  0x32   :  { %342 = vmatpush.bf16.msra.mxu2 %v493_v31 }
  0x33   :  { %174 = vmatmul.bf16.vlgmr.msra.gmra.mxu0 %v475_v12 }
  0x36   :  { %343 = vmatpush.bf16.msra.mxu2 %v492_v32 }
  0xb0   :  { %v175_v21 = vpop.f32.mrf.mxu0 }
  0xb1   :  { %v176_v23 = vadd.f32 %v509_v22, %v175_v21 }
  0xb3   :  { %v180_v26 = vmax.f32 %v176_v23, 0.0 }
  0xb8   :  { %v177_v24 = vpop.f32.mrf.mxu0 }
  0xb9   :  { %v178_v25 = vadd.f32 %v509_v22, %v177_v24 }
  0xbb   :  { %v181_v27 = vmax.f32 %v178_v25, 0.0 }
  0xbd   :  { %v182_v28 = vpack.c.bf16 %v181_v27, %v180_v26 }
  0xbf   :  { %259 = vmatmul.bf16.vlgmr.msra.gmra.mxu1 %v182_v28 }
 0x13c   :  { %v260_v33 = vpop.f32.mrf.mxu1 }
 0x13d   :  { %v261_v35 = vadd.f32 %v510_v34, %v260_v33 }
 0x13f   :  { %v265_v38 = vmax.f32 %v261_v35, 0.0 }
 0x144   :  { %v262_v36 = vpop.f32.mrf.mxu1 }
 0x145   :  { %v263_v37 = vadd.f32 %v510_v34, %v262_v36 }
 0x147   :  { %v266_v39 = vmax.f32 %v263_v37, 0.0 }
 0x149   :  { %v267_v40 = vpack.c.bf16 %v266_v39, %v265_v38 }
 0x14b   :  { %344 = vmatmul.bf16.vlgmr.msra.gmra.mxu2 %v267_v40 }
 0x1ce   :  { %v345_v42 = vpop.f32.mrf.mxu2 }
 0x1cf   :  { %v346_v43 = vadd.f32 %v511_v41, %v345_v42 }
 0x1d1   :  { %v350_v44 = vmax.f32 %v346_v43, 0.0 }
 0x1d3   :  { %352 = vst [vmem:[#allocation10] sm:$0xff] %v350_v44 }
 0x1d6   :  { %v347_v45 = vpop.f32.mrf.mxu2 }
 0x1d7   :  { %v348_v46 = vadd.f32 %v511_v41, %v347_v45 }
 0x1d9   :  { %v351_v47 = vmax.f32 %v348_v46, 0.0 }
 0x1db   :  { %353 = vst [vmem:[#allocation10 + $0x8] sm:$0xff] %v351_v47 }
 0x1dc   :  { %366 = dma.vmem_to_hbm [thread:$0]  %s359_s25, 256, %s361_s5, [#allocation4], %s647_s28, %s647_s28, %s648_s29  }
 0x1dd   :  { %638 = dma.done.wait [#allocation4], 256  }
 0x1de   :  { %639 = vsyncadd [#allocation4], 4294967040 }
 0x1df   :  { %371 = vsyncpa [#allocation3], 1 }
 0x1e0   :  { %372 = vsyncpa [#allocation6], 1 }
 0x1e1   :  { %373 = vsyncpa [#allocation9], 1 }
 0x1e2   :  { %374 = vsyncpa [#allocation4], 1 }

</bundles_post_ra>
